<compile_context>
chip_gen: v7x
topology: tpu7x:2x2x1
jax: 0.10.0
libtpu: 0.0.40
codegen_flags: <defaults>
</compile_context>

<pallas_src>
import jax
import jax.numpy as jnp
from jax.experimental import pallas as pl
from jax.experimental.pallas import tpu as pltpu

N_NOISE = 100      # n_noise in the PyTorch module
N_HIDDEN = 256
N_FEATURES = 10    # n_features in the PyTorch module

TILE_B_MAX = 2048  # batch rows per grid step; ~7 MB VMEM footprint at f32


def _round_up(x, m):
    return ((x + m - 1) // m) * m


def _choose_tile_b(batch):
    b8 = _round_up(max(batch, 1), 8)          # sublane-aligned tile height
    tile = min(TILE_B_MAX, b8)
    # If one step would swallow a large batch, split it in two so the "parallel"
    # grid axis has >= 2 steps and can shard across both v7x TensorCores.
    if tile == b8 and b8 >= 1024:
        tile = _round_up(pl.cdiv(b8, 2), 8)
    return tile


def _generator_kernel(x_ref, w1_ref, b1_ref, w2_ref, b2_ref, o_ref):
    # Layer 1: f32 MXU matmul (K=100, Mosaic pads internally), f32 bias + ReLU.
    h = jnp.dot(x_ref[...], w1_ref[...], preferred_element_type=jnp.float32)
    h = jnp.maximum(h + b1_ref[...], 0.0)
    # Layer 2: narrow-N (N=10) matmul + bias. Masked vst on the 10-lane output is
    # cheap here since MXU/VPU have huge slack; it saves 12x output HBM traffic
    # versus a 128-lane padded f32 writeback.
    y = jnp.dot(h, w2_ref[...], preferred_element_type=jnp.float32)
    o_ref[...] = (y + b2_ref[...]).astype(o_ref.dtype)


def generator_forward(x, w1, b1, w2, b2, *, tile_b=None):
    """x: (B, 100) f32, w1: (100, 256), b1: (256,), w2: (256, 10), b2: (10,)
    -> (B, 10) f32 (same semantics as the PyTorch Generator.forward)."""
    batch = x.shape[0]
    if tile_b is None:
        tile_b = _choose_tile_b(batch)
    grid_b = pl.cdiv(batch, tile_b)

    # Biases as (1, N) rows so they broadcast against (tile_b, N) activations.
    b1_2d = b1.reshape(1, N_HIDDEN).astype(jnp.float32)
    b2_2d = b2.reshape(1, N_FEATURES).astype(jnp.float32)

    const = lambda shape: pl.BlockSpec(shape, lambda i: (0,) * len(shape))

    return pl.pallas_call(
        _generator_kernel,
        out_shape=jax.ShapeDtypeStruct((batch, N_FEATURES), jnp.float32),
        grid_spec=pl.GridSpec(
            grid=(grid_b,),
            in_specs=[
                # x streamed tile-by-tile; last dim is the full 100 (no wrapper pad).
                pl.BlockSpec((tile_b, N_NOISE), lambda i: (i, 0)),
                const((N_NOISE, N_HIDDEN)),      # W1  (VMEM-resident)
                const((1, N_HIDDEN)),            # b1  (VMEM-resident)
                const((N_HIDDEN, N_FEATURES)),   # W2  (VMEM-resident)
                const((1, N_FEATURES)),          # b2  (VMEM-resident)
            ],
            out_specs=pl.BlockSpec((tile_b, N_FEATURES), lambda i: (i, 0)),
        ),
        compiler_params=pltpu.CompilerParams(
            dimension_semantics=("parallel",)),   # megacore sharding on v7x
    )(x, w1, b1_2d, w2, b2_2d)


def init_params(key):
    """Deterministic init mimicking PyTorch nn.Linear default (U[-1/sqrt(fan_in), +])."""
    k1, k2, k3, k4 = jax.random.split(key, 4)
    lim1 = 1.0 / jnp.sqrt(jnp.float32(N_NOISE))
    lim2 = 1.0 / jnp.sqrt(jnp.float32(N_HIDDEN))
    w1 = jax.random.uniform(k1, (N_NOISE, N_HIDDEN), jnp.float32, -lim1, lim1)
    b1 = jax.random.uniform(k2, (N_HIDDEN,), jnp.float32, -lim1, lim1)
    w2 = jax.random.uniform(k3, (N_HIDDEN, N_FEATURES), jnp.float32, -lim2, lim2)
    b2 = jax.random.uniform(k4, (N_FEATURES,), jnp.float32, -lim2, lim2)
    return w1, b1, w2, b2


def reference_forward(x, w1, b1, w2, b2):
    h = jnp.maximum(x @ w1 + b1, 0.0)
    return h @ w2 + b2


if __name__ == "__main__":
    key = jax.random.PRNGKey(0)
    kx, kp = jax.random.split(key)

    batch = 8
    x = jax.random.normal(kx, (batch, N_NOISE), dtype=jnp.float32)
    w1, b1, w2, b2 = init_params(kp)

    out = generator_forward(x, w1, b1, w2, b2)
    out = jax.block_until_ready(out)
    assert out.shape == (batch, N_FEATURES)

    ref = reference_forward(x, w1, b1, w2, b2)
    assert jnp.allclose(out, ref, atol=1e-2, rtol=1e-2), (
        float(jnp.max(jnp.abs(out - ref))))

    print("KERNEL_OK")
</pallas_src>

<mosaic_0001>
module attributes {stable_mosaic.version = 11 : i64} {
  func.func @_generator_kernel(%arg0: i32, %arg1: memref<8x100xf32, #tpu.memory_space<vmem>>, %arg2: memref<100x256xf32, #tpu.memory_space<vmem>>, %arg3: memref<1x256xf32, #tpu.memory_space<vmem>>, %arg4: memref<256x10xf32, #tpu.memory_space<vmem>>, %arg5: memref<1x10xf32, #tpu.memory_space<vmem>>, %arg6: memref<8x10xf32, #tpu.memory_space<vmem>>) attributes {dimension_semantics = [#tpu.dimension_semantics<parallel>], iteration_bounds = array<i64: 1>, scalar_prefetch = 0 : i64, scratch_operands = 0 : i64, tpu.core_type = #tpu.core_type<tc>, window_params = [{transform_indices = @transform_0, window_bounds = array<i64: 8, 100>}, {pipeline_mode = #tpu.pipeline_mode<synchronous>, transform_indices = @transform_1, window_bounds = array<i64: 100, 256>}, {pipeline_mode = #tpu.pipeline_mode<synchronous>, transform_indices = @transform_2, window_bounds = array<i64: 1, 256>}, {pipeline_mode = #tpu.pipeline_mode<synchronous>, transform_indices = @transform_3, window_bounds = array<i64: 256, 10>}, {pipeline_mode = #tpu.pipeline_mode<synchronous>, transform_indices = @transform_4, window_bounds = array<i64: 1, 10>}, {transform_indices = @transform_5, window_bounds = array<i64: 8, 10>}]} {
    %c0 = arith.constant 0 : index
    %c0_0 = arith.constant 0 : index
    %0 = vector.load %arg1[%c0, %c0_0] : memref<8x100xf32, #tpu.memory_space<vmem>>, vector<8x100xf32>
    %c0_1 = arith.constant 0 : index
    %c0_2 = arith.constant 0 : index
    %1 = vector.load %arg2[%c0_1, %c0_2] : memref<100x256xf32, #tpu.memory_space<vmem>>, vector<100x256xf32>
    %cst = arith.constant dense<0.000000e+00> : vector<8x256xf32>
    %2 = tpu.matmul %0, %1, %cst {dimension_numbers = #tpu.dot_dimension_numbers<[1], [0], [0], [1], [0, 0, 1, 1], [], []>} : vector<8x100xf32>, vector<100x256xf32>, vector<8x256xf32> -> vector<8x256xf32>
    %c0_3 = arith.constant 0 : index
    %c0_4 = arith.constant 0 : index
    %3 = vector.load %arg3[%c0_3, %c0_4] : memref<1x256xf32, #tpu.memory_space<vmem>>, vector<1x256xf32>
    %4 = vector.broadcast %3 : vector<1x256xf32> to vector<8x256xf32>
    %5 = arith.addf %2, %4 : vector<8x256xf32>
    %cst_5 = arith.constant 0.000000e+00 : f32
    %6 = vector.broadcast %cst_5 : f32 to vector<8x256xf32>
    %7 = arith.maximumf %5, %6 : vector<8x256xf32>
    %c0_6 = arith.constant 0 : index
    %c0_7 = arith.constant 0 : index
    %8 = vector.load %arg4[%c0_6, %c0_7] : memref<256x10xf32, #tpu.memory_space<vmem>>, vector<256x10xf32>
    %cst_8 = arith.constant dense<0.000000e+00> : vector<8x10xf32>
    %9 = tpu.matmul %7, %8, %cst_8 {dimension_numbers = #tpu.dot_dimension_numbers<[1], [0], [0], [1], [0, 0, 1, 1], [], []>} : vector<8x256xf32>, vector<256x10xf32>, vector<8x10xf32> -> vector<8x10xf32>
    %c0_9 = arith.constant 0 : index
    %c0_10 = arith.constant 0 : index
    %10 = vector.load %arg5[%c0_9, %c0_10] : memref<1x10xf32, #tpu.memory_space<vmem>>, vector<1x10xf32>
    %11 = vector.broadcast %10 : vector<1x10xf32> to vector<8x10xf32>
    %12 = arith.addf %9, %11 : vector<8x10xf32>
    %c0_11 = arith.constant 0 : index
    %c0_12 = arith.constant 0 : index
    %13 = vector.load %arg6[%c0_11, %c0_12] : memref<8x10xf32, #tpu.memory_space<vmem>>, vector<8x10xf32>
    tpu.vector_store %arg6[%c0_11, %c0_12], %12 {strides = array<i32>} : memref<8x10xf32, #tpu.memory_space<vmem>>, vector<8x10xf32>,
    return
  }
  func.func @transform_0(%arg0: i32) -> (i32, i32) {
    %c0_i32 = arith.constant 0 : i32
    %c0_i32_0 = arith.constant 0 : i32
    return %arg0, %c0_i32 : i32, i32
  }
  func.func @transform_1(%arg0: i32) -> (i32, i32) {
    %c0_i32 = arith.constant 0 : i32
    %c0_i32_0 = arith.constant 0 : i32
    %c0_i32_1 = arith.constant 0 : i32
    return %c0_i32, %c0_i32_0 : i32, i32
  }
  func.func @transform_2(%arg0: i32) -> (i32, i32) {
    %c0_i32 = arith.constant 0 : i32
    %c0_i32_0 = arith.constant 0 : i32
    %c0_i32_1 = arith.constant 0 : i32
    return %c0_i32, %c0_i32_0 : i32, i32
  }
  func.func @transform_3(%arg0: i32) -> (i32, i32) {
    %c0_i32 = arith.constant 0 : i32
    %c0_i32_0 = arith.constant 0 : i32
    %c0_i32_1 = arith.constant 0 : i32
    return %c0_i32, %c0_i32_0 : i32, i32
  }
  func.func @transform_4(%arg0: i32) -> (i32, i32) {
    %c0_i32 = arith.constant 0 : i32
    %c0_i32_0 = arith.constant 0 : i32
    %c0_i32_1 = arith.constant 0 : i32
    return %c0_i32, %c0_i32_0 : i32, i32
  }
  func.func @transform_5(%arg0: i32) -> (i32, i32) {
    %c0_i32 = arith.constant 0 : i32
    %c0_i32_0 = arith.constant 0 : i32
    return %arg0, %c0_i32 : i32, i32
  }
}

</mosaic_0001>

<bundles_post_ra>
// kernel: tpu_custom_call.1
= control target key start
LH: loop header
LB: loop body
LE: loop exit
PB: predicated region body
PF: predicated region fallthrough
CT: control target
= control target key end

     0   :  { %v390_v7 = vmov 0.0   ;;  %s619_s0 = inlined_call_operand.vmem [shape: f32[8,100], index: 0, kind: input, shape index: {}]   ;;  %s620_s1 = inlined_call_operand.vmem [shape: f32[100,256], index: 1, kind: input, shape index: {}]   ;;  %s621_s2 = inlined_call_operand.vmem [shape: f32[1,256], index: 2, kind: input, shape index: {}]   ;;  %s622_s3 = inlined_call_operand.vmem [shape: f32[256,10], index: 3, kind: input, shape index: {}]   ;;  %s623_s4 = inlined_call_operand.vmem [shape: f32[1,10], index: 4, kind: input, shape index: {}]   ;;  %s624_s5 = inlined_call_operand.hbm [shape: f32[8,10], index: 5, kind: output, shape index: {}]  }
   0x1   :  { %v23_v0 = vld [vmem:[%s620_s1 + $0x8] sm:$0xff]  ;;  %v25_v1 = vld [vmem:[%s620_s1 + $0x18] sm:$0xff]  ;;  %v22_v2 = vld [vmem:[%s620_s1] sm:$0xff]  ;;  %135 = vmatprep.mubr.f32.mxu0 %v390_v7 }
   0x2   :  { %v308_v3 = vpack.c.bf16 %v25_v1, %v23_v0  ;;  %v24_v4 = vld [vmem:[%s620_s1 + $0x10] sm:$0xff]  ;;  %v27_v5 = vld [vmem:[%s620_s1 + $0x28] sm:$0xff]  ;;  %v29_v6 = vld [vmem:[%s620_s1 + $0x38] sm:$0xff] }
   0x3   :  { %v310_v8 = vpack.c.bf16 %v24_v4, %v22_v2  ;;  %v312_v9 = vpack.c.bf16 %v29_v6, %v27_v5  ;;  %v26_v10 = vld [vmem:[%s620_s1 + $0x20] sm:$0xff]  ;;  %v28_v11 = vld [vmem:[%s620_s1 + $0x30] sm:$0xff]  ;;  %v31_v12 = vld [vmem:[%s620_s1 + $0x48] sm:$0xff] }
   0x4   :  { %309 = vmatprep.subr.bf16.mxu0 %v308_v3  ;;  %v33_v13 = vld [vmem:[%s620_s1 + $0x58] sm:$0xff]  ;;  %v314_v14 = vpack.c.bf16 %v28_v11, %v26_v10  ;;  %v30_v16 = vld [vmem:[%s620_s1 + $0x40] sm:$0xff]  ;;  %v32_v17 = vld [vmem:[%s620_s1 + $0x50] sm:$0xff] }
   0x5   :  { %311 = vmatpush1.bf16.msra.mxu0 %v310_v8  ;;  %v316_v15 = vpack.c.bf16 %v33_v13, %v31_v12  ;;  %v35_v18 = vld [vmem:[%s620_s1 + $0x68] sm:$0xff]  ;;  %v37_v19 = vld [vmem:[%s620_s1 + $0x78] sm:$0xff]  ;;  %v34_v20 = vld [vmem:[%s620_s1 + $0x60] sm:$0xff]  ;;  %v318_v21 = vpack.c.bf16 %v32_v17, %v30_v16 }
   0x6   :  { %313 = vmatprep.subr.bf16.mxu0 %v312_v9  ;;  %v36_v22 = vld [vmem:[%s620_s1 + $0x70] sm:$0xff]  ;;  %v39_v23 = vld [vmem:[%s620_s1 + $0x88] sm:$0xff]  ;;  %v41_v24 = vld [vmem:[%s620_s1 + $0x98] sm:$0xff]  ;;  %v320_v25 = vpack.c.bf16 %v37_v19, %v35_v18 }
   0x7   :  { %v160_v26 = vld [vmem:[%s622_s3 + $0x80] sm:$0xff]  ;;  %v161_v27 = vld [vmem:[%s622_s3 + $0x88] sm:$0xff]  ;;  %v162_v31 = vld [vmem:[%s622_s3 + $0x90] sm:$0xff]  ;;  %v322_v38 = vpack.c.bf16 %v36_v22, %v34_v20  ;;  %v324_v40 = vpack.c.bf16 %v41_v24, %v39_v23 }
   0x8   :  { %v144_v28 = vld [vmem:[%s622_s3] sm:$0xff]  ;;  %v332_v29 = vpack.c.bf16 %v161_v27, %v160_v26  ;;  %v145_v30 = vld [vmem:[%s622_s3 + $0x8] sm:$0xff]  ;;  %v163_v32 = vld [vmem:[%s622_s3 + $0x98] sm:$0xff] }
   0x9   :  { %315 = vmatpush1.bf16.msra.mxu0 %v314_v14  ;;  %v334_v33 = vpack.c.bf16 %v145_v30, %v144_v28  ;;  %v336_v34 = vpack.c.bf16 %v163_v32, %v162_v31  ;;  %v146_v35 = vld [vmem:[%s622_s3 + $0x10] sm:$0xff]  ;;  %v147_v36 = vld [vmem:[%s622_s3 + $0x18] sm:$0xff]  ;;  %v164_v37 = vld [vmem:[%s622_s3 + $0xa0] sm:$0xff] }
   0xa   :  { %317 = vmatprep.subr.bf16.mxu0 %v316_v15  ;;  %333 = vmatprep.subr.bf16.mxu1 %v332_v29  ;;  %v165_v39 = vld [vmem:[%s622_s3 + $0xa8] sm:$0xff]  ;;  %v38_v41 = vld [vmem:[%s620_s1 + $0x80] sm:$0xff]  ;;  %v40_v42 = vld [vmem:[%s620_s1 + $0x90] sm:$0xff]  ;;  %v338_v44 = vpack.c.bf16 %v147_v36, %v146_v35 }
   0xb   :  { %v43_v43 = vld [vmem:[%s620_s1 + $0xa8] sm:$0xff]  ;;  %335 = vmatpush3.bf16.msra.mxu1 %v334_v33  ;;  %v45_v45 = vld [vmem:[%s620_s1 + $0xb8] sm:$0xff]  ;;  %v340_v46 = vpack.c.bf16 %v165_v39, %v164_v37  ;;  %v148_v47 = vld [vmem:[%s622_s3 + $0x20] sm:$0xff]  ;;  %v326_v51 = vpack.c.bf16 %v40_v42, %v38_v41 }
   0xc   :  { %337 = vmatprep.subr.bf16.mxu1 %v336_v34  ;;  %v149_v48 = vld [vmem:[%s622_s3 + $0x28] sm:$0xff]  ;;  %v166_v49 = vld [vmem:[%s622_s3 + $0xb0] sm:$0xff]  ;;  %v167_v50 = vld [vmem:[%s622_s3 + $0xb8] sm:$0xff]  ;;  %v328_v52 = vpack.c.bf16 %v45_v45, %v43_v43 }
   0xd   :  { %319 = vmatpush1.bf16.msra.mxu0 %v318_v21  ;;  %v42_v53 = vld [vmem:[%s620_s1 + $0xa0] sm:$0xff]  ;;  %v44_v54 = vld [vmem:[%s620_s1 + $0xb0] sm:$0xff]  ;;  %v342_v55 = vpack.c.bf16 %v149_v48, %v148_v47  ;;  %v344_v56 = vpack.c.bf16 %v167_v50, %v166_v49  ;;  %v151_v58 = vld [vmem:[%s622_s3 + $0x38] sm:$0xff] }
   0xe   :  { %321 = vmatprep.subr.bf16.mxu0 %v320_v25  ;;  %v150_v57 = vld [vmem:[%s622_s3 + $0x30] sm:$0xff] }
   0xf   :  { %339 = vmatpush3.bf16.msra.mxu1 %v338_v44 }
  0x10   :  { %341 = vmatprep.subr.bf16.mxu1 %v340_v46 }
  0x11   :  { %323 = vmatpush1.bf16.msra.mxu0 %v322_v38 }
  0x12   :  { %325 = vmatprep.subr.bf16.mxu0 %v324_v40 }
  0x13   :  { %10 = vsyncpa [#allocation3], 0  ;;  %v168_v59 = vld [vmem:[%s622_s3 + $0xc0] sm:$0xff]  ;;  %v169_v60 = vld [vmem:[%s622_s3 + $0xc8] sm:$0xff]  ;;  %v330_v61 = vpack.c.bf16 %v44_v54, %v42_v53  ;;  %343 = vmatpush3.bf16.msra.mxu1 %v342_v55  ;;  %v346_v62 = vpack.c.bf16 %v151_v58, %v150_v57  ;;  %vm64_vm0 = vcmask 1043456   ;;  %vm60_vm1 = vcmask 818176  }
  0x14   :  { %v47_v63 = vld [vmem:[%s620_s1 + $0xc8] sm:$0xf]  ;;  %345 = vmatprep.subr.bf16.mxu1 %v344_v56  ;;  %v348_v0 = vpack.c.bf16 %v169_v60, %v168_v59  ;;  %v152_v1 = vld [vmem:[%s622_s3 + $0x40] sm:$0xff]  ;;  %v170_v3 = vld [vmem:[%s622_s3 + $0xd0] sm:$0xff]  ;;  %v50_v24 = vlaneseq  ;;  %s391_s12 = smov [#allocation2]   ;;  %vm253_vm2 = vcmask 80896  }
  0x15   :  { %327 = vmatpush1.bf16.msra.mxu0 %v326_v51  ;;  %v153_v2 = vld [vmem:[%s622_s3 + $0x48] sm:$0xff]  ;;  %v171_v4 = vld [vmem:[%s622_s3 + $0xd8] sm:$0xff]  ;;  %v46_v5 = vld [vmem:[%s620_s1 + $0xc0] sm:$0xf]  ;;  %s261_s13 = sshll.u32 %s391_s12, 4  ;;  %s262_s13 = int_to_ptr.vmem [resolvable:$true] %s261_s13 }
  0x16   :  { %329 = vmatprep.subr.bf16.mxu0 %v328_v52  ;;  %v350_v6 = vpack.c.bf16 %v153_v2, %v152_v1  ;;  %v21_v7 = vld [vmem:[%s619_s0] sm:$0xff]  ;;  %v352_v8 = vpack.c.bf16 %v171_v4, %v170_v3  ;;  %v154_v9 = vld [vmem:[%s622_s3 + $0x50] sm:$0xff]  ;;  %v155_v10 = vld [vmem:[%s622_s3 + $0x58] sm:$0xff]  ;;  %v51_v25 = vshrl.u32 %v50_v24, 7  ;;  %p371_p1 = scmp.lt.s32.totalorder %s262_s13, %s262_s13 }
  0x17   :  { %347 = vmatpush3.bf16.msra.mxu1 %v346_v62  ;;  %v172_v11 = vld [vmem:[%s622_s3 + $0xe0] sm:$0xff]  ;;  %v173_v12 = vld [vmem:[%s622_s3 + $0xe8] sm:$0xff]  ;;  %v354_v13 = vpack.c.bf16 %v155_v10, %v154_v9  ;;  %v174_v18 = vld [vmem:[%s622_s3 + $0xf0] sm:$0xff] }
  0x18   :  { %349 = vmatprep.subr.bf16.mxu1 %v348_v0  ;;  %v356_v14 = vpack.c.bf16 %v173_v12, %v172_v11  ;;  %v156_v15 = vld [vmem:[%s622_s3 + $0x60] sm:$0xff]  ;;  %v157_v16 = vld [vmem:[%s622_s3 + $0x68] sm:$0xff]  ;;  %v175_v19 = vld [vmem:[%s622_s3 + $0xf8] sm:$0xff]  ;;  %v52_v26 = vsub.s32 0, %v51_v25  ;;  %v56_v28 = vsub.s32 1, %v51_v25 }
  0x19   :  { %331 = vmatpush1.bf16.msra.mxu0 %v330_v61  ;;  %v358_v17 = vpack.c.bf16 %v157_v16, %v156_v15  ;;  %v360_v20 = vpack.c.bf16 %v175_v19, %v174_v18  ;;  %v158_v21 = vld [vmem:[%s622_s3 + $0x70] sm:$0xff]  ;;  %v159_v22 = vld [vmem:[%s622_s3 + $0x78] sm:$0xff]  ;;  %v48_v27 = vld [vmem:[%s621_s2] sm:$0x3]  ;;  %s366_s2 = scalar_lea.vmem %s262_s13, 128 }
  0x1a   :  { %269 = vmatprep.subr.msk.mxu0 %vm64_vm0, %v47_v63  ;;  %v362_v23 = vpack.c.bf16 %v159_v22, %v158_v21  ;;  %v53_v29 = vrot.slane %v48_v27, %v52_v26  ;;  %v57_v30 = vrot.slane %v48_v27, %v56_v28  ;;  %v272_v38 = vld [vmem:[%s623_s4] ss:$0 sm:$0xff]  ;;  %p367_p0 = scmp.ne.s32.totalorder %s262_s13, %s366_s2  ;;  %p372_p2 = scmp.lt.s32.totalorder %s366_s2, %s366_s2 }
  0x1b   :  { %351 = vmatpush3.bf16.msra.mxu1 %v350_v6 }
  0x1c   :  { %353 = vmatprep.subr.bf16.mxu1 %v352_v8  ;;  %p373_p3 = por %p372_p2, %p371_p1 }
  0x1d   :  { %270 = vmatpush1.msk.msra.mxu0 %vm64_vm0, %v46_v5 }
  0x1e   :  { %271 = vmatmul.mubr.msk.f32.vlgmr.msra.gmra.mrb[0].mxu0 %vm60_vm1, %v21_v7  ;;  %p374_p4 = pnand %p373_p3, %p367_p0 }
  0x1f   :  { %355 = vmatpush3.bf16.msra.mxu1 %v354_v13 }
  0x20   :  { %357 = vmatprep.subr.bf16.mxu1 %v356_v14 }
  0x23   :  { %359 = vmatpush3.bf16.msra.mxu1 %v358_v17 }
  0x24   :  { %361 = vmatprep.subr.bf16.mxu1 %v360_v20 }
  0x27   :  { %363 = vmatpush3.bf16.msra.mxu1 %v362_v23 }
  0xf1   :  { %v137_v31 = vpop.f32.mrb[0].mxu0 }
  0xf2   :  { %v138_v32 = vadd.f32 %v137_v31, %v53_v29  ;;  %v139_v33 = vpop.f32.mrb[1].mxu0 }
  0xf3   :  { %v140_v34 = vadd.f32 %v139_v33, %v57_v30 }
  0xf4   :  { %v142_v36 = vmax.f32 %v138_v32, 0.0 }
  0xf5   :  { %v143_v35 = vmax.f32 %v140_v34, 0.0 }
  0xf7   :  { %247 = vmatprep.mubr.f32.mxu1 %v143_v35 }
  0xf8   :  { %248 = vmatmul.mubr.f32.vlgmr.msra.gmra.mrb[0].mxu1 %v142_v36 }
 0x1cb   :  { %v305_v37 = vpop.f32.mrb[0].mxu1 }
 0x1cc   :  { %v306_v39 = vpop.f32.mrb[1].mxu1 }
 0x1cd   :  { %v307_v40 = vadd.f32 %v306_v39, %v305_v37 }
 0x1cf   :  { %v250_v41 = vadd.f32 %v307_v40, %v272_v38 }
 0x1d1   :  { %254 = vst.msk [vmem:[#allocation2] sm:$0xff] %vm253_vm2, %v250_v41 }
 0x1d2   :  { %377 = shalt.err (!%p374_p4)
}
 0x1d3   :  { %s378_s16 = scalar_lea.hbm %s624_s5, 128 }
 0x1d4   :  { %p379_p5 = scmp.ne.s32.totalorder %s624_s5, %s378_s16  ;;  %p382_p6 = scmp.lt.u32.totalorder %s378_s16, %s624_s5 }
 0x1d6   :  { %p384_p7 = pnand %p382_p6, %p379_p5 }
 0x1d8   :  { %387 = shalt.err (!%p384_p7)
}
 0x1d9   :  { %264 = dma.vmem_to_hbm [thread:$0]  %s262_s13, 128, %s624_s5, [#allocation3]  }
 0x1da   :  { %388 = dma.done.wait [#allocation3], 128  }
 0x1db   :  { %389 = vsyncadd [#allocation3], 4294967168 }
 0x1dc   :  { %268 = vsyncpa [#allocation3], 1 }

</bundles_post_ra>
